<compile_context>
chip_gen: v6e
topology: v6e:2x2x1
jax: 0.10.0
libtpu: 0.0.40
codegen_flags: <defaults>
</compile_context>

<pallas_src>
import functools

import jax
import jax.numpy as jnp
from jax.experimental import pallas as pl
from jax.experimental.pallas import tpu as pltpu

LANES = 128
NCORES = 2                      # leading "parallel" axis (v7x megacore); harmless on 1-TC chips
TARGET_BLOCK_BYTES = 2 * 1024 * 1024   # ~2 MiB per input block


def _sublane_multiple(dtype):
    # 8 for 4-byte, 16 for 2-byte, 32 for 1-byte dtypes.
    return max(8, 32 // jnp.dtype(dtype).itemsize)


def _cauchy_kernel(x_ref, t_ref, o_ref, *, inv_gamma, valid_rows, row_tile,
                   tiles_per_core):
    c = pl.program_id(0)
    t = pl.program_id(1)

    @pl.when(t == 0)
    def _():
        o_ref[...] = jnp.zeros_like(o_ref)

    x = x_ref[...].astype(jnp.float32)
    y = t_ref[...].astype(jnp.float32)
    d = x - y
    val = 0.5 * jnp.log1p(d * d * jnp.float32(inv_gamma))

    # Mask rows that fall outside the real array (partial trailing block or a
    # clamped duplicate block from the uneven core split).  Lanes inside valid
    # rows are either real data or zero padding (contributes exactly 0), so no
    # lane-level mask is needed.
    row0 = (c * tiles_per_core + t) * row_tile
    ridx = jax.lax.broadcasted_iota(jnp.int32, val.shape, 0)
    val = jnp.where(row0 + ridx < valid_rows, val, 0.0)

    # Vectorised partial reduction: (row_tile, 128) -> (8, 128).  The reshape
    # is tile-aligned (row_tile % 8 == 0) so it is a free view.
    o_ref[...] += val.reshape(-1, 8, LANES).sum(axis=0)


def cauchy_loss(inputs, targets, gamma=1.0):
    assert inputs.shape == targets.shape
    n = int(inputs.size)
    assert n > 0

    sub = max(_sublane_multiple(inputs.dtype), _sublane_multiple(targets.dtype))
    itemsize = max(jnp.dtype(inputs.dtype).itemsize,
                   jnp.dtype(targets.dtype).itemsize)

    # Flatten in native dtype (no astype copy).  Pad only when necessary:
    #  - up to 127 elements so the flat array reshapes to (rows, 128),
    #  - tiny inputs up to one sublane tile of rows.
    flat_x = inputs.reshape(-1)
    flat_t = targets.reshape(-1)
    rows = max(pl.cdiv(n, LANES), sub)
    padded = rows * LANES
    if padded != n:
        flat_x = jnp.pad(flat_x, (0, padded - n))
        flat_t = jnp.pad(flat_t, (0, padded - n))
    x2d = flat_x.reshape(rows, LANES)
    t2d = flat_t.reshape(rows, LANES)

    # Large row tile (~2 MiB per input block), sublane-aligned, <= rows.
    max_rows = max(sub, (TARGET_BLOCK_BYTES // (LANES * itemsize)) // sub * sub)
    row_tile = max(sub, min(max_rows, rows // sub * sub))

    total_tiles = pl.cdiv(rows, row_tile)
    tiles_per_core = pl.cdiv(total_tiles, NCORES)

    def in_map(c, t):
        # Clamp so extra iterations (from the uneven per-core split) re-read
        # the last valid block; their contribution is fully masked in-kernel.
        return (jnp.minimum(c * tiles_per_core + t, total_tiles - 1), 0)

    kernel = functools.partial(
        _cauchy_kernel,
        inv_gamma=1.0 / float(gamma),
        valid_rows=rows,
        row_tile=row_tile,
        tiles_per_core=tiles_per_core,
    )

    partials = pl.pallas_call(
        kernel,
        out_shape=jax.ShapeDtypeStruct((NCORES * 8, LANES), jnp.float32),
        grid_spec=pltpu.PrefetchScalarGridSpec(
            num_scalar_prefetch=0,
            grid=(NCORES, tiles_per_core),
            in_specs=[
                pl.BlockSpec((row_tile, LANES), in_map),
                pl.BlockSpec((row_tile, LANES), in_map),
            ],
            out_specs=pl.BlockSpec((8, LANES), lambda c, t: (c, 0)),
        ),
        compiler_params=pltpu.CompilerParams(
            dimension_semantics=("parallel", "arbitrary"),
        ),
    )(x2d, t2d)

    # Tiny cross-partial / cross-lane reduction and mean outside the kernel.
    return jnp.sum(partials) / jnp.float32(n)


def cauchy_loss_ref(inputs, targets, gamma=1.0):
    diff = inputs.astype(jnp.float32) - targets.astype(jnp.float32)
    return jnp.mean(0.5 * jnp.log((gamma + diff ** 2) / gamma))


if __name__ == "__main__":
    key = jax.random.PRNGKey(0)
    k1, k2, k3, k4 = jax.random.split(key, 4)

    # Primary case: NCHW, as in the PyTorch module.
    shape = (2, 4, 16, 16)
    x = jax.random.normal(k1, shape, dtype=jnp.float32)
    t = jax.random.normal(k2, shape, dtype=jnp.float32)
    loss = jax.block_until_ready(cauchy_loss(x, t, gamma=1.0))
    ref = cauchy_loss_ref(x, t, gamma=1.0)
    assert jnp.allclose(loss, ref, rtol=1e-5, atol=1e-6), (loss, ref)

    # Ragged size (n % 128 != 0) and gamma != 1: exercises the in-kernel mask
    # and the folded 1/gamma constant.
    shape2 = (3, 5, 7, 11)
    x2 = jax.random.normal(k3, shape2, dtype=jnp.float32)
    t2 = jax.random.normal(k4, shape2, dtype=jnp.float32)
    loss2 = jax.block_until_ready(cauchy_loss(x2, t2, gamma=2.5))
    ref2 = cauchy_loss_ref(x2, t2, gamma=2.5)
    assert jnp.allclose(loss2, ref2, rtol=1e-5, atol=1e-6), (loss2, ref2)

    # bf16 transport (halved HBM traffic), upcast to f32 inside the kernel.
    xb = x.astype(jnp.bfloat16)
    tb = t.astype(jnp.bfloat16)
    loss3 = jax.block_until_ready(cauchy_loss(xb, tb, gamma=1.0))
    ref3 = cauchy_loss_ref(xb, tb, gamma=1.0)
    assert jnp.allclose(loss3, ref3, rtol=1e-5, atol=1e-5), (loss3, ref3)

    print("KERNEL_OK")
</pallas_src>

<mosaic_0001>
module attributes {stable_mosaic.version = 11 : i64} {
  func.func @_cauchy_kernel(%arg0: i32, %arg1: i32, %arg2: memref<16x128xf32, #tpu.memory_space<vmem>>, %arg3: memref<16x128xf32, #tpu.memory_space<vmem>>, %arg4: memref<8x128xf32, #tpu.memory_space<vmem>>) attributes {dimension_semantics = [#tpu.dimension_semantics<parallel>, #tpu.dimension_semantics<arbitrary>], iteration_bounds = array<i64: 2, 1>, scalar_prefetch = 0 : i64, scratch_operands = 0 : i64, tpu.core_type = #tpu.core_type<tc>, window_params = [{transform_indices = @transform_0, window_bounds = array<i64: 16, 128>}, {transform_indices = @transform_1, window_bounds = array<i64: 16, 128>}, {transform_indices = @transform_2, window_bounds = array<i64: 8, 128>}]} {
    %c0_i32 = arith.constant 0 : i32
    %0 = arith.cmpi eq, %arg1, %c0_i32 : i32
    %1 = arith.extui %0 : i1 to i32
    %c0_i32_0 = arith.constant 0 : i32
    %2 = arith.cmpi ne, %1, %c0_i32_0 : i32
    scf.if %2 {
      %cst_12 = arith.constant 0.000000e+00 : f32
      %27 = vector.broadcast %cst_12 : f32 to vector<8x128xf32>
      %c0_13 = arith.constant 0 : index
      %c0_14 = arith.constant 0 : index
      %28 = vector.load %arg4[%c0_13, %c0_14] : memref<8x128xf32, #tpu.memory_space<vmem>>, vector<8x128xf32>
      tpu.vector_store %arg4[%c0_13, %c0_14], %27 {strides = array<i32>} : memref<8x128xf32, #tpu.memory_space<vmem>>, vector<8x128xf32>,
    } else {
    }
    %c0 = arith.constant 0 : index
    %c0_1 = arith.constant 0 : index
    %3 = vector.load %arg2[%c0, %c0_1] : memref<16x128xf32, #tpu.memory_space<vmem>>, vector<16x128xf32>
    %c0_2 = arith.constant 0 : index
    %c0_3 = arith.constant 0 : index
    %4 = vector.load %arg3[%c0_2, %c0_3] : memref<16x128xf32, #tpu.memory_space<vmem>>, vector<16x128xf32>
    %5 = arith.subf %3, %4 : vector<16x128xf32>
    %6 = arith.mulf %5, %5 : vector<16x128xf32>
    %cst = arith.constant 1.000000e+00 : f32
    %7 = vector.broadcast %cst : f32 to vector<16x128xf32>
    %8 = arith.mulf %6, %7 : vector<16x128xf32>
    %9 = math.log1p %8 : vector<16x128xf32>
    %cst_4 = arith.constant 5.000000e-01 : f32
    %10 = vector.broadcast %cst_4 : f32 to vector<16x128xf32>
    %11 = arith.mulf %10, %9 : vector<16x128xf32>
    %c1_i32 = arith.constant 1 : i32
    %12 = arith.muli %arg0, %c1_i32 : i32
    %13 = arith.addi %12, %arg1 : i32
    %c16_i32 = arith.constant 16 : i32
    %14 = arith.muli %13, %c16_i32 : i32
    %15 = tpu.iota {dimensions = array<i32: 0>} : vector<16x128xi32>
    %16 = vector.broadcast %14 : i32 to vector<16x128xi32>
    %17 = arith.addi %16, %15 : vector<16x128xi32>
    %c16_i32_5 = arith.constant 16 : i32
    %18 = vector.broadcast %c16_i32_5 : i32 to vector<16x128xi32>
    %19 = arith.cmpi slt, %17, %18 : vector<16x128xi32>
    %cst_6 = arith.constant 0.000000e+00 : f32
    %20 = vector.broadcast %cst_6 : f32 to vector<16x128xf32>
    %21 = arith.select %19, %11, %20 : vector<16x128xi1>, vector<16x128xf32>
    %c0_7 = arith.constant 0 : index
    %c0_8 = arith.constant 0 : index
    %22 = vector.load %arg4[%c0_7, %c0_8] : memref<8x128xf32, #tpu.memory_space<vmem>>, vector<8x128xf32>
    %23 = vector.shape_cast %21 : vector<16x128xf32> to vector<2x8x128xf32>
    %cst_9 = arith.constant dense<0.000000e+00> : vector<8x128xf32>
    %24 = vector.multi_reduction <add>, %23, %cst_9 [0] : vector<2x8x128xf32> to vector<8x128xf32>
    %25 = arith.addf %22, %24 : vector<8x128xf32>
    %c0_10 = arith.constant 0 : index
    %c0_11 = arith.constant 0 : index
    %26 = vector.load %arg4[%c0_10, %c0_11] : memref<8x128xf32, #tpu.memory_space<vmem>>, vector<8x128xf32>
    tpu.vector_store %arg4[%c0_10, %c0_11], %25 {strides = array<i32>} : memref<8x128xf32, #tpu.memory_space<vmem>>, vector<8x128xf32>,
    return
  }
  func.func @transform_0(%arg0: i32, %arg1: i32) -> (i32, i32) {
    %c1_i32 = arith.constant 1 : i32
    %0 = arith.muli %arg0, %c1_i32 : i32
    %1 = arith.addi %0, %arg1 : i32
    %c0_i32 = arith.constant 0 : i32
    %2 = arith.minsi %1, %c0_i32 : i32
    %c0_i32_0 = arith.constant 0 : i32
    %c0_i32_1 = arith.constant 0 : i32
    return %2, %c0_i32_0 : i32, i32
  }
  func.func @transform_1(%arg0: i32, %arg1: i32) -> (i32, i32) {
    %c1_i32 = arith.constant 1 : i32
    %0 = arith.muli %arg0, %c1_i32 : i32
    %1 = arith.addi %0, %arg1 : i32
    %c0_i32 = arith.constant 0 : i32
    %2 = arith.minsi %1, %c0_i32 : i32
    %c0_i32_0 = arith.constant 0 : i32
    %c0_i32_1 = arith.constant 0 : i32
    return %2, %c0_i32_0 : i32, i32
  }
  func.func @transform_2(%arg0: i32, %arg1: i32) -> (i32, i32) {
    %c0_i32 = arith.constant 0 : i32
    %c0_i32_0 = arith.constant 0 : i32
    return %arg0, %c0_i32 : i32, i32
  }
}

</mosaic_0001>

<bundles_post_ra>
// kernel: tpu_custom_call.1
= control target key start
LH: loop header
LB: loop body
LE: loop exit
PB: predicated region body
PF: predicated region fallthrough
CT: control target
= control target key end

     0   :  { %7 = vsyncpa [#allocation3], 0  ;;  %s885_s0 = inlined_call_operand.hbm [shape: f32[16,128], index: 0, kind: input, shape index: {}]   ;;  %s886_s1 = inlined_call_operand.hbm [shape: f32[16,128], index: 1, kind: input, shape index: {}]   ;;  %s887_s2 = inlined_call_operand.hbm [shape: f32[16,128], index: 2, kind: output, shape index: {}]  }
   0x1   :  { %9 = vsyncpa [#allocation3 + $0x1], 0 }
   0x2   :  { %10 = vsyncpa [#allocation6], 0 }
   0x3   :  { %12 = vsyncpa [#allocation6 + $0x1], 0 }
   0x4   :  { %13 = vsyncpa [#allocation4], 0 }
   0x5   :  { %15 = vsyncpa [#allocation4 + $0x1], 0  ;;  %s706_s9 = smov 0   ;;  %s708_s10 = smov 0  }
   0x6   :  { %s710_s11 = smov 0   ;;  %s712_s12 = smov 0  }
   0x7   :  { %s714_s13 = smov 0   ;;  %s716_s14 = smov 0  }
   0x8   :  { %s718_s15 = smov 0   ;;  %s720_s16 = smov 0  }
   0x9 LB: > { %s404_s17 = sadd.s32 4294967295, %s684_s16   ;;  %s405_s18 = sadd.s32 4294967294, %s684_s16   ;;  %s684_s16 = sphi %s720_s16, %s21_s16   ;;  %s680_s15 = sphi %s718_s15, %s906_s15   ;;  %s676_s14 = sphi %s716_s14, %s905_s14   ;;  %s672_s13 = sphi %s714_s13, %s875_s13   ;;  %s668_s12 = sphi %s712_s12, %s904_s12   ;;  %s664_s11 = sphi %s710_s11, %s903_s11   ;;  %s660_s10 = sphi %s708_s10, %s902_s10   ;;  %s656_s9 = sphi %s706_s9, %s901_s9  }
   0xa   : > { %s33_s19 = sadd.s32 1, %s680_s15  ;;  %p653_p1 = scmp.ne.s32.totalorder %s672_s13, 0 }
   0xb   : > { %p35_p0 = scmp.ge.s32.totalorder %s33_s19, 2  ;;  %p54_p2 = scmp.eq.s32.totalorder %s684_s16, 0 }
   0xc   : > { %p59_p3 = scmp.ne.s32.totalorder %s672_s13, %s668_s12  ;;  %p60_p5 = scmp.eq.s32.totalorder %s404_s17, 0 }
   0xd   : > { %s908_s19 = smov (%p35_p0, %s33_s19), 0  ;;  %p752_p4 = por %p653_p1, %p54_p2 }
   0xe   : > { %p756_p6 = por %p60_p5, %p59_p3  ;;  %s101_s22 = ssub.s32 %s680_s15, %s908_s19 }
   0xf   : > { %p102_p7 = scmp.eq.s32.totalorder %s101_s22, 0  ;;  %s104_s23 = sadd.s32 1, %s664_s11 }
  0x10   : > { %s891_s21 = scalar_select %p756_p6, 1, 0 }
  0x11   : > { %s764_s24 = scalar_select %p102_p7, %s664_s11, %s104_s23  }
  0x12   : > { %p114_p8 = scmp.ne.s32.totalorder %s664_s11, %s660_s10  ;;  %p115_p9 = scmp.eq.s32.totalorder %s404_s17, 1 }
  0x13   : > { %p120_p10 = scmp.ne.s32.totalorder %s660_s10, %s656_s9  ;;  %p121_p11 = scmp.eq.s32.totalorder %s405_s18, 1 }
  0x14   : > { %p770_p12 = por %p115_p9, %p114_p8  ;;  %p442_p1 = scmp.lt.s32.totalorder %s684_s16, 2 }
  0x15   : > { %p775_p0 = por %p121_p11, %p120_p10  ;;  %s686_s27 = smov [#allocation2]  }
  0x16   : > { %s892_s25 = scalar_select %p770_p12, 1, 0 }
  0x17   : > { %s893_s26 = scalar_select %p775_p0, 1, 0 }
  0x18   : > { %s155_s28 = sshll.u32 %s686_s27, 4  ;;  %p782_p2 = pnand %p442_p1, %p752_p4  ;;  %s156_s28 = int_to_ptr.vmem [resolvable:$true] %s155_s28 }
  0x19   : > { %s523_s4 = scalar_lea.hbm %s885_s0, 256 }
  0x1a   : > { %p524_p3 = scmp.ne.s32.totalorder %s885_s0, %s523_s4  ;;  %p525_p5 = pneg %p782_p2 }
  0x1b   : > { %p530_p8 = scmp.lt.s32.totalorder %s523_s4, %s523_s4 }
  0x1c   : > { %p526_p7 = pnand %p525_p5, %p524_p3 }
  0x1e   : > { %p527_p4 = pneg %p526_p7 }
  0x20   : > { %p532_p9 = pnand %p530_p8, %p527_p4 }
  0x22   : > { %535 = shalt.err (!%p532_p9)
}
  0x23   : > { %s536_s7 = scalar_lea.vmem %s156_s28, 256  ;;  %s543_s8 = scalar_lea.vmem %s156_s28, 512 }
  0x24   : > { %p537_p10 = scmp.ne.s32.totalorder %s156_s28, %s536_s7  ;;  %p544_p13 = scmp.lt.s32.totalorder %s156_s28, %s156_s28 }
  0x25   : > { %p545_p0 = scmp.lt.s32.totalorder %s543_s8, %s536_s7 }
  0x26   : > { %p539_p11 = pnand %p537_p10, %p525_p5 }
  0x27   : > { %p546_p12 = por %p545_p0, %p544_p13 }
  0x28   : > { %p540_p1 = pneg %p539_p11 }
  0x2a   : > { %p547_p6 = pnand %p546_p12, %p540_p1 }
  0x2c   : > { %550 = shalt.err (!%p547_p6)
}
  0x2d   : > { %s687_s12 = smov 128   ;;  %s688_s17 = smov 8  }
  0x2e   : > { %434 = dma.hbm_to_vmem [thread:$0]  (!%p782_p2), %s885_s0, 256, %s156_s28, [#allocation3], %s687_s12, %s687_s12, %s688_s17  }
  0x2f   : > { %p414_p3 = scmp.ge.s32.totalorder %s684_s16, 1  ;;  %p187_p7 = scmp.lt.s32.totalorder %s684_s16, 3 }
  0x30   : > { %s689_s23 = smov [#allocation5]   ;;  %s551_s4 = scalar_lea.hbm %s886_s1, 256 }
  0x31   : > { %p807_p4 = pnand %p414_p3, %p187_p7  ;;  %s179_s27 = sshll.u32 %s689_s23, 4  ;;  %s180_s27 = int_to_ptr.vmem [resolvable:$true] %s179_s27 }
  0x32   : > { %p552_p6 = scmp.ne.s32.totalorder %s886_s1, %s551_s4  ;;  %p558_p0 = scmp.lt.s32.totalorder %s551_s4, %s551_s4 }
  0x33   : > { %s895_s22 = scalar_select %p807_p4, 1, 0 }
  0x34   : > { %p554_p12 = pnand %p552_p6, %p525_p5 }
  0x36   : > { %p555_p13 = pneg %p554_p12 }
  0x38   : > { %p560_p8 = pnand %p558_p0, %p555_p13 }
  0x3a   : > { %563 = shalt.err (!%p560_p8)
}
  0x3b   : > { %s564_s28 = scalar_lea.vmem %s180_s27, 256  ;;  %s571_s7 = scalar_lea.vmem %s180_s27, 512 }
  0x3c   : > { %p565_p9 = scmp.ne.s32.totalorder %s180_s27, %s564_s28  ;;  %p572_p1 = scmp.lt.s32.totalorder %s180_s27, %s180_s27 }
  0x3d   : > { %p573_p3 = scmp.lt.s32.totalorder %s571_s7, %s564_s28 }
  0x3e   : > { %p567_p10 = pnand %p565_p9, %p525_p5 }
  0x3f   : > { %p574_p7 = por %p573_p3, %p572_p1 }
  0x40   : > { %p568_p11 = pneg %p567_p10 }
  0x42   : > { %p575_p4 = pnand %p574_p7, %p568_p11 }
  0x44   : > { %578 = shalt.err (!%p575_p4)
}
  0x45   : > { %437 = dma.hbm_to_vmem [thread:$0]  (!%p782_p2), %s886_s1, 256, %s180_s27, [#allocation6], %s687_s12, %s687_s12, %s688_s17  }
  0x46   : > { %p896_p6 = scmp.ne.s32.totalorder %s895_s22, 0 }
  0x47   : > { %s193_s20 = sand.u32 (!%p896_p6), 1, %s672_s13   ;;  %p897_p5 = scmp.ne.s32.totalorder (!%p896_p6), %s891_s21, 0 }
  0x48   : > { %191 = sbr.rel (%p896_p6) target bundleno = 124 (0x7c), region = 28  ;;  %s415_s23 = sshll.u32 (!%p896_p6), %s193_s20, 4 }
  0x49   : > { %s194_s30 = scalar_lea.sflag (!%p896_p6), [#allocation3], %s193_s20  ;;  %s197_s3 = scalar_lea.vmem (!%p896_p6), [#allocation2], %s415_s23 }
  0x4d   : > { %642 = dma.done.wait (%p897_p5), %s194_s30, 256  }
  0x4e   : > { %644 = vsyncadd (%p897_p5), %s194_s30, 4294967040  ;;  %s203_s29 = scalar_lea.sflag [#allocation6], %s193_s20  ;;  %s206_s4 = scalar_lea.vmem [#allocation5], %s415_s23 }
  0x4f   : > { %646 = dma.done.wait (%p897_p5), %s203_s29, 256  }
  0x50   : > { %648 = vsyncadd (%p897_p5), %s203_s29, 4294967040  ;;  %v245_v0 = vld [vmem:[%s197_s3] sm:$0xff]  ;;  %v246_v1 = vld [vmem:[%s197_s3 + $0x8] sm:$0xff]  ;;  %v275_v10 = vlaneseq  ;;  %s418_s21 = sshll.u32 %s676_s14, 4  ;;  %s229_s12 = sand.u32 1, %s660_s10  }
  0x51   : > { %v247_v2 = vld [vmem:[%s206_s4] sm:$0xff]  ;;  %v248_v3 = vld [vmem:[%s206_s4 + $0x8] sm:$0xff]  ;;  %v278_v18 = vstv %s418_s21  ;;  %s417_s17 = sshll.u32 %s229_s12, 3  ;;  %s420_s22 = sshll.u32 %s676_s14, 7 }
  0x52   : > { %v249_v4 = vsub.f32 %v245_v0, %v247_v2  ;;  %v250_v5 = vsub.f32 %v246_v1, %v248_v3  ;;  %v276_v13 = vshrl.u32 %v275_v10, 7  ;;  %s231_s27 = scalar_lea.vmem [#allocation7], %s417_s17  ;;  %s301_s7 = scalar_lea.hbm %s887_s2, %s420_s22 }
  0x53   : > { %s303_s5 = sshll.u32 %s231_s27, 4  ;;  %s290_s8 = scalar_lea.sflag [#allocation4], %s229_s12  ;;  %s304_s5 = int_to_ptr.vmem [resolvable:$true] %s303_s5 }
  0x54   : > { %v251_v6 = vmul.f32 %v249_v4, %v249_v4  ;;  %v252_v7 = vmul.f32 %v250_v5, %v250_v5  ;;  %v277_v17 = vadd.s32 8, %v276_v13  ;;  %v279_v21 = vadd.s32 %v278_v18, %v276_v13  ;;  %s579_s18 = scalar_lea.vmem %s304_s5, 128  ;;  %p898_p4 = scmp.ne.s32.totalorder %s892_s25, 0 }
  0x55   : > { %p580_p2 = scmp.ne.s32.totalorder %s304_s5, %s579_s18  ;;  %s690_s20 = smov [#allocation7]  }
  0x56   : > { %v253_v8 = vadd.f32 1.0, %v251_v6  ;;  %v262_v9 = vadd.f32 1.0, %v252_v7  ;;  %v256_v11 = vmul.f32 -0.5, %v251_v6  ;;  %v265_v12 = vmul.f32 -0.5, %v252_v7  ;;  %s583_s23 = sshll.u32 %s690_s20, 4  ;;  %s584_s23 = int_to_ptr.vmem [resolvable:$false] %s583_s23 }
  0x57   : > { %v259_v15 = vand.u32 2147483647, %v251_v6  ;;  %v268_v19 = vand.u32 2147483647, %v252_v7  ;;  %v280_v24 = vadd.s32 %v278_v18, %v277_v17  ;;  %vm281_vm2 = vcmp.lt.s32.totalorder %v279_v21, 16  ;;  %p581_p12 = pnand %p580_p2, %p898_p4  ;;  %s585_s30 = scalar_lea.vmem %s584_s23, 256 }
  0x58   : > { %519 = vlog2.f32 %v253_v8  ;;  %v257_v14 = vadd.f32 1.0, %v256_v11  ;;  %v266_v16 = vadd.f32 1.0, %v265_v12  ;;  %p586_p0 = scmp.lt.s32.totalorder %s304_s5, %s584_s23  ;;  %p587_p8 = scmp.lt.s32.totalorder %s585_s30, %s579_s18 }
  0x59   : > { %521 = vlog2.f32 %v262_v9  ;;  %vm260_vm0 = vcmp.lt.f32.partialorder %v259_v15, 0.0004427343  ;;  %vm269_vm1 = vcmp.lt.f32.partialorder %v268_v19, 0.0004427343  ;;  %vm282_vm3 = vcmp.lt.s32.totalorder %v280_v24, 16  ;;  %p582_p13 = pneg %p581_p12 }
  0x5a   : > { %v258_v20 = vmul.f32 %v257_v14, %v251_v6  ;;  %v267_v23 = vmul.f32 %v266_v16, %v252_v7  ;;  %p588_p9 = por %p587_p8, %p586_p0 }
  0x5c   : > { %p589_p10 = pnand %p588_p9, %p582_p13 }
  0x65   : > { %v520_v22 = vpop.eup %519 }
  0x66   : > { %v522_v25 = vpop.eup %521  ;;  %v255_v26 = vmul.f32 0.6931472, %v520_v22 }
  0x67   : > { %v264_v27 = vmul.f32 0.6931472, %v522_v25 }
  0x68   : > { %v261_v28 = vsel %vm260_vm0, %v258_v20, %v255_v26 }
  0x69   : > { %v270_v29 = vsel %vm269_vm1, %v267_v23, %v264_v27  ;;  %v271_v30 = vmul.f32 0.5, %v261_v28 }
  0x6a   : > { %v272_v31 = vmul.f32 0.5, %v270_v29 }
  0x6b   : > { %v283_v32 = vsel %vm281_vm2, %v271_v30, 0.0 }
  0x6c   : > { %v284_v33 = vsel %vm282_vm3, %v272_v31, 0.0 }
  0x6d   : > { %v286_v34 = vadd.f32 %v284_v33, %v283_v32 }
  0x6f   : > { %288 = vst [vmem:[%s231_s27] sm:$0xff] %v286_v34 }
  0x70   : > { %592 = shalt.err (!%p589_p10)
}
  0x71   : > { %s593_s14 = scalar_lea.hbm %s301_s7, 128  ;;  %s597_s4 = scalar_lea.hbm %s887_s2, 256 }
  0x72   : > { %p594_p11 = scmp.ne.s32.totalorder %s301_s7, %s593_s14  ;;  %p598_p7 = scmp.lt.s32.totalorder %s301_s7, %s887_s2 }
  0x73   : > { %p599_p6 = scmp.lt.s32.totalorder %s597_s4, %s593_s14 }
  0x74   : > { %p595_p1 = pnand %p594_p11, %p898_p4 }
  0x75   : > { %p600_p5 = por %p599_p6, %p598_p7 }
  0x76   : > { %p596_p3 = pneg %p595_p1 }
  0x78   : > { %p601_p2 = pnand %p600_p5, %p596_p3 }
  0x7a   : > { %604 = shalt.err (!%p601_p2)
}
  0x7b   : > { %429 = dma.vmem_to_hbm [thread:$0]  (%p898_p4), %s304_s5, 128, %s301_s7, %s290_s8  }
  0x7c PF: > { %s315_s17 = sand.u32 1, %s656_s9   ;;  %p899_p12 = scmp.ne.s32.totalorder %s893_s26, 0 }
  0x7d   : > { %p900_p13 = scmp.ge.s32.totalorder %s684_s16, 2  ;;  %s316_s22 = scalar_lea.sflag [#allocation4], %s315_s17 }
  0x7f   : > { %p439_p0 = pnand %p900_p13, %p899_p12 }
  0x81   : > { %p440_p8 = pneg %p439_p0 }
  0x83   : > { %650 = dma.done.wait (%p440_p8), %s316_s22, 128  }
  0x84   : > { %652 = vsyncadd (%p440_p8), %s316_s22, 4294967168  ;;  %s21_s16 = sadd.s32 1, %s684_s16   ;;  %s901_s9 = smov %s660_s10 }
  0x85   : > { %p18_p9 = scmp.ge.s32.totalorder %s21_s16, 4   ;;  %s902_s10 = smov %s664_s11 }
  0x86   : > { %s903_s11 = smov %s764_s24  ;;  %s904_s12 = smov %s672_s13 }
  0x87   : > { %s875_s13 = smov 0   ;;  %s905_s14 = smov %s680_s15 }
  0x88   : > { %s906_s15 = smov %s908_s19  ;;  %20 = sbr.rel (!%p18_p9) target bundleno = 9 (0x9), region = 90 }
  0x8d   :  { %321 = vsyncpa [#allocation3], 1 }
  0x8e   :  { %323 = vsyncpa [#allocation3 + $0x1], 1 }
  0x8f   :  { %324 = vsyncpa [#allocation6], 1 }
  0x90   :  { %326 = vsyncpa [#allocation6 + $0x1], 1 }
  0x91   :  { %327 = vsyncpa [#allocation4], 1 }
  0x92   :  { %329 = vsyncpa [#allocation4 + $0x1], 1 }

</bundles_post_ra>
